<compile_context>
chip_gen: v6e
topology: v6e:2x2x1
jax: 0.10.0
libtpu: 0.0.40
codegen_flags: <defaults>
</compile_context>

<pallas_src>
import functools

import jax
import jax.numpy as jnp
from jax.experimental import pallas as pl
from jax.experimental.pallas import tpu as pltpu

IN_DIM = 37
HID = 64
OUT_DIM = 4


def _round_up(n: int, m: int) -> int:
    return ((n + m - 1) // m) * m


def mlp_kernel(x_ref, w1_ref, b1_ref, w2_ref, b2_ref, w3_ref, b3_ref, o_ref):
    """One batch tile: (TB, 37) -> (TB, 4). MXU matmuls accumulate in f32;
    bias-add / ReLU stay in f32 on the VPU (v5e has no bf16 VPU path)."""
    x = x_ref[...]
    # fc1 + relu
    h1 = jnp.dot(x, w1_ref[...], preferred_element_type=jnp.float32)
    h1 = jnp.maximum(h1 + b1_ref[...], 0.0)
    # fc2 + relu (cast activation back to the weight dtype for the MXU operand)
    h2 = jnp.dot(h1.astype(w2_ref.dtype), w2_ref[...],
                 preferred_element_type=jnp.float32)
    h2 = jnp.maximum(h2 + b2_ref[...], 0.0)
    # fc3 (no activation)
    out = jnp.dot(h2.astype(w3_ref.dtype), w3_ref[...],
                  preferred_element_type=jnp.float32)
    o_ref[...] = (out + b3_ref[...]).astype(o_ref.dtype)


@functools.partial(jax.jit, static_argnames=("block_b",))
def mlp_forward(x, params, *, block_b: int = 4096):
    """y = relu(x@W1+b1); y = relu(y@W2+b2); y = y@W3+b3, batch-tiled over B."""
    w1, b1, w2, b2, w3, b3 = params
    out_dtype = jnp.float32

    B = x.shape[0]
    # Batch tile: large tiles amortize the ~0.35 us per-grid-step overhead.
    #  * B <= block_b: one block of exactly B rows (block dim == array dim is
    #    always legal, even if B is not a multiple of 8).
    #  * B  > block_b: tile of block_b rounded up to a multiple of 16 (covers
    #    both the f32 sublane rule and bf16 packing); the last block may be
    #    partial and is masked by Pallas — no jnp.pad copy of x.
    if B <= block_b:
        TB = B
    else:
        TB = _round_up(block_b, 16)
    grid = (pl.cdiv(B, TB),)

    def resident(a):
        # Same block every grid step -> stays VMEM-resident (no re-staging).
        return pl.BlockSpec(a.shape, lambda i: (0,) * a.ndim)

    x_bytes = x.dtype.itemsize
    w_bytes = w1.dtype.itemsize
    cost = pl.CostEstimate(
        flops=2 * B * (IN_DIM * HID + HID * HID + HID * OUT_DIM),
        transcendentals=0,
        bytes_accessed=(B * (IN_DIM * x_bytes + OUT_DIM * 4)
                        + (IN_DIM * HID + HID * HID + HID * OUT_DIM) * w_bytes),
    )

    out = pl.pallas_call(
        mlp_kernel,
        out_shape=jax.ShapeDtypeStruct((B, OUT_DIM), out_dtype),
        grid=grid,
        in_specs=[
            pl.BlockSpec((TB, IN_DIM), lambda i: (i, 0)),  # streamed x tiles
            resident(w1), resident(b1),
            resident(w2), resident(b2),
            resident(w3), resident(b3),
        ],
        out_specs=pl.BlockSpec((TB, OUT_DIM), lambda i: (i, 0)),
        compiler_params=pltpu.CompilerParams(
            dimension_semantics=("parallel",),   # 2 TCs on v7x; harmless elsewhere
            vmem_limit_bytes=32 * 1024 * 1024,   # headroom for big tiles on v5e
        ),
        cost_estimate=cost,
    )(x, w1, b1, w2, b2, w3, b3)

    return out


def cast_matmul_operands(params, dtype):
    """Cast weights (MXU operands) to `dtype`; keep biases in f32.
    For the fast bf16 path, the caller should also supply x in bf16 so the
    HBM x stream is halved (casting inside the wrapper would re-read x)."""
    w1, b1, w2, b2, w3, b3 = params
    return (w1.astype(dtype), b1, w2.astype(dtype), b2, w3.astype(dtype), b3)


def init_params(key):
    # Deterministic init mimicking PyTorch's nn.Linear default:
    # U(-1/sqrt(fan_in), 1/sqrt(fan_in)) for both weight and bias.
    def linear(key, fan_in, fan_out):
        kw, kb = jax.random.split(key)
        bound = 1.0 / jnp.sqrt(jnp.float32(fan_in))
        w = jax.random.uniform(kw, (fan_in, fan_out), jnp.float32, -bound, bound)
        b = jax.random.uniform(kb, (1, fan_out), jnp.float32, -bound, bound)
        return w, b

    k1, k2, k3 = jax.random.split(key, 3)
    w1, b1 = linear(k1, IN_DIM, HID)
    w2, b2 = linear(k2, HID, HID)
    w3, b3 = linear(k3, HID, OUT_DIM)
    return w1, b1, w2, b2, w3, b3


def _reference(x, params):
    w1, b1, w2, b2, w3, b3 = params
    h = jnp.maximum(x @ w1 + b1, 0.0)
    h = jnp.maximum(h @ w2 + b2, 0.0)
    return h @ w3 + b3


if __name__ == "__main__":
    key = jax.random.PRNGKey(0)
    kp, kx1, kx2 = jax.random.split(key, 3)
    params = init_params(kp)

    # --- 1) Small batch (typical tiny input for this module), f32, single block.
    B = 8
    x = jax.random.normal(kx1, (B, IN_DIM), jnp.float32)
    out = jax.block_until_ready(mlp_forward(x, params))
    ref = _reference(x, params)
    assert out.shape == (B, OUT_DIM)
    assert jnp.allclose(out, ref, atol=1e-5, rtol=1e-5)

    # --- 2) Ragged multi-tile grid (exercises masked tail block + pipelining,
    #         no jnp.pad copy), f32.
    B2 = 300
    x2 = jax.random.normal(kx2, (B2, IN_DIM), jnp.float32)
    out2 = jax.block_until_ready(mlp_forward(x2, params, block_b=64))
    ref2 = _reference(x2, params)
    assert out2.shape == (B2, OUT_DIM)
    assert jnp.allclose(out2, ref2, atol=1e-5, rtol=1e-5)

    # --- 3) bf16 fast path: bf16 x stream + bf16 weights with f32 accumulation
    #         and f32 bias/ReLU. Loose tolerance is expected precision loss vs
    #         the f32 reference, not a bug.
    params_bf16 = cast_matmul_operands(params, jnp.bfloat16)
    out3 = jax.block_until_ready(
        mlp_forward(x2.astype(jnp.bfloat16), params_bf16, block_b=64))
    assert out3.shape == (B2, OUT_DIM)
    assert jnp.allclose(out3, ref2, atol=5e-2, rtol=5e-2)

    print("KERNEL_OK")
</pallas_src>

<mosaic_0001>
module attributes {stable_mosaic.version = 11 : i64} {
  func.func @mlp_kernel(%arg0: i32, %arg1: memref<8x37xf32, #tpu.memory_space<vmem>>, %arg2: memref<37x64xf32, #tpu.memory_space<vmem>>, %arg3: memref<1x64xf32, #tpu.memory_space<vmem>>, %arg4: memref<64x64xf32, #tpu.memory_space<vmem>>, %arg5: memref<1x64xf32, #tpu.memory_space<vmem>>, %arg6: memref<64x4xf32, #tpu.memory_space<vmem>>, %arg7: memref<1x4xf32, #tpu.memory_space<vmem>>, %arg8: memref<8x4xf32, #tpu.memory_space<vmem>>) attributes {dimension_semantics = [#tpu.dimension_semantics<parallel>], iteration_bounds = array<i64: 1>, scalar_prefetch = 0 : i64, scratch_operands = 0 : i64, tpu.core_type = #tpu.core_type<tc>, window_params = [{transform_indices = @transform_0, window_bounds = array<i64: 8, 37>}, {pipeline_mode = #tpu.pipeline_mode<synchronous>, transform_indices = @transform_1, window_bounds = array<i64: 37, 64>}, {pipeline_mode = #tpu.pipeline_mode<synchronous>, transform_indices = @transform_2, window_bounds = array<i64: 1, 64>}, {pipeline_mode = #tpu.pipeline_mode<synchronous>, transform_indices = @transform_3, window_bounds = array<i64: 64, 64>}, {pipeline_mode = #tpu.pipeline_mode<synchronous>, transform_indices = @transform_4, window_bounds = array<i64: 1, 64>}, {pipeline_mode = #tpu.pipeline_mode<synchronous>, transform_indices = @transform_5, window_bounds = array<i64: 64, 4>}, {pipeline_mode = #tpu.pipeline_mode<synchronous>, transform_indices = @transform_6, window_bounds = array<i64: 1, 4>}, {transform_indices = @transform_7, window_bounds = array<i64: 8, 4>}]} {
    %c0 = arith.constant 0 : index
    %c0_0 = arith.constant 0 : index
    %0 = vector.load %arg1[%c0, %c0_0] : memref<8x37xf32, #tpu.memory_space<vmem>>, vector<8x37xf32>
    %c0_1 = arith.constant 0 : index
    %c0_2 = arith.constant 0 : index
    %1 = vector.load %arg2[%c0_1, %c0_2] : memref<37x64xf32, #tpu.memory_space<vmem>>, vector<37x64xf32>
    %cst = arith.constant dense<0.000000e+00> : vector<8x64xf32>
    %2 = tpu.matmul %0, %1, %cst {dimension_numbers = #tpu.dot_dimension_numbers<[1], [0], [0], [1], [0, 0, 1, 1], [], []>} : vector<8x37xf32>, vector<37x64xf32>, vector<8x64xf32> -> vector<8x64xf32>
    %c0_3 = arith.constant 0 : index
    %c0_4 = arith.constant 0 : index
    %3 = vector.load %arg3[%c0_3, %c0_4] : memref<1x64xf32, #tpu.memory_space<vmem>>, vector<1x64xf32>
    %4 = vector.broadcast %3 : vector<1x64xf32> to vector<8x64xf32>
    %5 = arith.addf %2, %4 : vector<8x64xf32>
    %cst_5 = arith.constant 0.000000e+00 : f32
    %6 = vector.broadcast %cst_5 : f32 to vector<8x64xf32>
    %7 = arith.maximumf %5, %6 : vector<8x64xf32>
    %c0_6 = arith.constant 0 : index
    %c0_7 = arith.constant 0 : index
    %8 = vector.load %arg4[%c0_6, %c0_7] : memref<64x64xf32, #tpu.memory_space<vmem>>, vector<64x64xf32>
    %cst_8 = arith.constant dense<0.000000e+00> : vector<8x64xf32>
    %9 = tpu.matmul %7, %8, %cst_8 {dimension_numbers = #tpu.dot_dimension_numbers<[1], [0], [0], [1], [0, 0, 1, 1], [], []>} : vector<8x64xf32>, vector<64x64xf32>, vector<8x64xf32> -> vector<8x64xf32>
    %c0_9 = arith.constant 0 : index
    %c0_10 = arith.constant 0 : index
    %10 = vector.load %arg5[%c0_9, %c0_10] : memref<1x64xf32, #tpu.memory_space<vmem>>, vector<1x64xf32>
    %11 = vector.broadcast %10 : vector<1x64xf32> to vector<8x64xf32>
    %12 = arith.addf %9, %11 : vector<8x64xf32>
    %cst_11 = arith.constant 0.000000e+00 : f32
    %13 = vector.broadcast %cst_11 : f32 to vector<8x64xf32>
    %14 = arith.maximumf %12, %13 : vector<8x64xf32>
    %c0_12 = arith.constant 0 : index
    %c0_13 = arith.constant 0 : index
    %15 = vector.load %arg6[%c0_12, %c0_13] : memref<64x4xf32, #tpu.memory_space<vmem>>, vector<64x4xf32>
    %cst_14 = arith.constant dense<0.000000e+00> : vector<8x4xf32>
    %16 = tpu.matmul %14, %15, %cst_14 {dimension_numbers = #tpu.dot_dimension_numbers<[1], [0], [0], [1], [0, 0, 1, 1], [], []>} : vector<8x64xf32>, vector<64x4xf32>, vector<8x4xf32> -> vector<8x4xf32>
    %c0_15 = arith.constant 0 : index
    %c0_16 = arith.constant 0 : index
    %17 = vector.load %arg7[%c0_15, %c0_16] : memref<1x4xf32, #tpu.memory_space<vmem>>, vector<1x4xf32>
    %18 = vector.broadcast %17 : vector<1x4xf32> to vector<8x4xf32>
    %19 = arith.addf %16, %18 : vector<8x4xf32>
    %c0_17 = arith.constant 0 : index
    %c0_18 = arith.constant 0 : index
    %20 = vector.load %arg8[%c0_17, %c0_18] : memref<8x4xf32, #tpu.memory_space<vmem>>, vector<8x4xf32>
    tpu.vector_store %arg8[%c0_17, %c0_18], %19 {strides = array<i32>} : memref<8x4xf32, #tpu.memory_space<vmem>>, vector<8x4xf32>,
    return
  }
  func.func @transform_0(%arg0: i32) -> (i32, i32) {
    %c0_i32 = arith.constant 0 : i32
    %c0_i32_0 = arith.constant 0 : i32
    return %arg0, %c0_i32 : i32, i32
  }
  func.func @transform_1(%arg0: i32) -> (i32, i32) {
    %c0_i32 = arith.constant 0 : i32
    %c0_i32_0 = arith.constant 0 : i32
    %c0_i32_1 = arith.constant 0 : i32
    return %c0_i32, %c0_i32_0 : i32, i32
  }
  func.func @transform_2(%arg0: i32) -> (i32, i32) {
    %c0_i32 = arith.constant 0 : i32
    %c0_i32_0 = arith.constant 0 : i32
    %c0_i32_1 = arith.constant 0 : i32
    return %c0_i32, %c0_i32_0 : i32, i32
  }
  func.func @transform_3(%arg0: i32) -> (i32, i32) {
    %c0_i32 = arith.constant 0 : i32
    %c0_i32_0 = arith.constant 0 : i32
    %c0_i32_1 = arith.constant 0 : i32
    return %c0_i32, %c0_i32_0 : i32, i32
  }
  func.func @transform_4(%arg0: i32) -> (i32, i32) {
    %c0_i32 = arith.constant 0 : i32
    %c0_i32_0 = arith.constant 0 : i32
    %c0_i32_1 = arith.constant 0 : i32
    return %c0_i32, %c0_i32_0 : i32, i32
  }
  func.func @transform_5(%arg0: i32) -> (i32, i32) {
    %c0_i32 = arith.constant 0 : i32
    %c0_i32_0 = arith.constant 0 : i32
    %c0_i32_1 = arith.constant 0 : i32
    return %c0_i32, %c0_i32_0 : i32, i32
  }
  func.func @transform_6(%arg0: i32) -> (i32, i32) {
    %c0_i32 = arith.constant 0 : i32
    %c0_i32_0 = arith.constant 0 : i32
    %c0_i32_1 = arith.constant 0 : i32
    return %c0_i32, %c0_i32_0 : i32, i32
  }
  func.func @transform_7(%arg0: i32) -> (i32, i32) {
    %c0_i32 = arith.constant 0 : i32
    %c0_i32_0 = arith.constant 0 : i32
    return %arg0, %c0_i32 : i32, i32
  }
}

</mosaic_0001>

<bundles_post_ra>
// kernel: mlp_forward.1
= control target key start
LH: loop header
LB: loop body
LE: loop exit
PB: predicated region body
PF: predicated region fallthrough
CT: control target
= control target key end

     0   :  { %12 = vsyncpa [#allocation3], 0  ;;  %s603_s0 = inlined_call_operand.vmem [shape: f32[8,37], index: 0, kind: input, shape index: {}]   ;;  %s604_s1 = inlined_call_operand.hbm [shape: f32[37,64], index: 1, kind: input, shape index: {}]   ;;  %s605_s2 = inlined_call_operand.vmem [shape: f32[1,64], index: 2, kind: input, shape index: {}]   ;;  %s606_s3 = inlined_call_operand.vmem [shape: f32[64,64], index: 3, kind: input, shape index: {}]   ;;  %s607_s4 = inlined_call_operand.hbm [shape: f32[1,64], index: 4, kind: input, shape index: {}]   ;;  %s608_s5 = inlined_call_operand.vmem [shape: f32[64,4], index: 5, kind: input, shape index: {}]   ;;  %s609_s6 = inlined_call_operand.vmem [shape: f32[1,4], index: 6, kind: input, shape index: {}]   ;;  %s610_s7 = inlined_call_operand.vmem [shape: f32[8,4], index: 7, kind: output, shape index: {}]  }
   0x1   :  { %13 = vsyncpa [#allocation5], 0  ;;  %s462_s24 = smov [#allocation2]  }
   0x2   :  { %s21_s25 = sshll.u32 %s462_s24, 4  ;;  %s22_s25 = int_to_ptr.vmem [resolvable:$true] %s21_s25 }
   0x3   :  { %s426_s26 = scalar_lea.vmem %s22_s25, 640  ;;  %p431_p1 = scmp.lt.s32.totalorder %s22_s25, %s22_s25 }
   0x4   :  { %p427_p0 = scmp.ne.s32.totalorder %s22_s25, %s426_s26  ;;  %p432_p2 = scmp.lt.s32.totalorder %s426_s26, %s426_s26 }
   0x6   :  { %p433_p3 = por %p432_p2, %p431_p1 }
   0x8   :  { %p434_p4 = pnand %p433_p3, %p427_p0 }
   0xa   :  { %437 = shalt.err (!%p434_p4)
}
   0xb   :  { %s463_s27 = smov 128   ;;  %s464_s28 = smov 8  }
   0xc   :  { %27 = dma.hbm_to_vmem [thread:$0]  %s604_s1, 640, %s22_s25, [#allocation3], %s463_s27, %s463_s27, %s464_s28  }
   0xd   :  { %s465_s8 = smov [#allocation4]  }
   0xe   :  { %s38_s9 = sshll.u32 %s465_s8, 4  ;;  %s39_s9 = int_to_ptr.vmem [resolvable:$true] %s38_s9 }
   0xf   :  { %s446_s10 = scalar_lea.vmem %s39_s9, 16  ;;  %s450_s11 = scalar_lea.vmem %s39_s9, 32 }
  0x10   :  { %p447_p5 = scmp.ne.s32.totalorder %s39_s9, %s446_s10  ;;  %p451_p6 = scmp.lt.s32.totalorder %s39_s9, %s39_s9 }
  0x11   :  { %p452_p7 = scmp.lt.s32.totalorder %s450_s11, %s446_s10 }
  0x13   :  { %p453_p8 = por %p452_p7, %p451_p6 }
  0x15   :  { %p454_p9 = pnand %p453_p8, %p447_p5 }
  0x17   :  { %457 = shalt.err (!%p454_p9)
}
  0x18   :  { %41 = dma.hbm_to_vmem [thread:$0]  %s607_s4, 16, %s39_s9, [#allocation5]  }
  0x19   :  { %458 = dma.done.wait [#allocation3], 640  }
  0x1a   :  { %459 = vsyncadd [#allocation3], 4294966656 }
  0x1b   :  { %460 = dma.done.wait [#allocation5], 16  }
  0x1c   :  { %461 = vsyncadd [#allocation5], 4294967280  ;;  %v466_v0 = vmov 0.0   ;;  %vm467_vm0 = vmmov 0   ;;  %vm69_vm1 = vcmask 1044480   ;;  %v56_v2 = vld [vmem:[#allocation2 + $0x18] sm:$0xff] }
  0x1d   :  { %361 = vmatprep.subr.mxu0 %v466_v0  ;;  %371 = vmatprep.mubr.msk.f32.mxu0 %vm467_vm0, %v466_v0  ;;  %v57_v1 = vld [vmem:[#allocation2 + $0x20] sm:$0x1f]  ;;  %v55_v3 = vld [vmem:[#allocation2 + $0x10] sm:$0xff]  ;;  %v151_v4 = vld [vmem:[%s606_s3 + $0x38] sm:$0xff]  ;;  %vm65_vm2 = vcmask 302080   ;;  %vm159_vm3 = vcmask 523264  }
  0x1e   :  { %374 = vmatprep.subr.mxu1 %v466_v0  ;;  %390 = vmatprep.mubr.msk.f32.mxu1 %vm467_vm0, %v466_v0  ;;  %v150_v5 = vld [vmem:[%s606_s3 + $0x30] sm:$0xff]  ;;  %v54_v6 = vld [vmem:[#allocation2 + $0x8] sm:$0xff]  ;;  %v53_v8 = vld [vmem:[#allocation2] sm:$0xff]  ;;  %vm322_vm4 = vcmask 31744  }
  0x1f   :  { %362 = vmatpush3.msk.msra.mxu0 %vm69_vm1, %v57_v1  ;;  %375 = vmatpush3.msra.mxu1 %v151_v4  ;;  %v149_v7 = vld [vmem:[%s606_s3 + $0x28] sm:$0xff]  ;;  %v148_v9 = vld [vmem:[%s606_s3 + $0x20] sm:$0xff]  ;;  %v147_v11 = vld [vmem:[%s606_s3 + $0x18] sm:$0xff] }
  0x20   :  { %363 = vmatprep.subr.mxu0 %v466_v0  ;;  %376 = vmatprep.subr.mxu1 %v466_v0  ;;  %v52_v10 = vld [vmem:[%s603_s0] sm:$0xff]  ;;  %v146_v12 = vld [vmem:[%s606_s3 + $0x10] sm:$0xff]  ;;  %v145_v13 = vld [vmem:[%s606_s3 + $0x8] sm:$0xff] }
  0x21   :  { %364 = vmatpush3.msra.mxu0 %v56_v2  ;;  %377 = vmatpush3.msra.mxu1 %v150_v5  ;;  %v144_v14 = vld [vmem:[%s606_s3] sm:$0xff]  ;;  %v241_v15 = vld [vmem:[%s608_s5 + $0x38] sm:$0xff]  ;;  %v240_v16 = vld [vmem:[%s608_s5 + $0x30] sm:$0xff] }
  0x22   :  { %365 = vmatprep.subr.mxu0 %v466_v0  ;;  %378 = vmatprep.subr.mxu1 %v466_v0  ;;  %v239_v17 = vld [vmem:[%s608_s5 + $0x28] sm:$0xff]  ;;  %v238_v18 = vld [vmem:[%s608_s5 + $0x20] sm:$0xff]  ;;  %v237_v19 = vld [vmem:[%s608_s5 + $0x18] sm:$0xff] }
  0x23   :  { %366 = vmatpush3.msra.mxu0 %v55_v3  ;;  %379 = vmatpush3.msra.mxu1 %v149_v7  ;;  %v330_v20 = vld [vmem:[%s605_s2] ss:$0 sm:$0xff]  ;;  %v236_v25 = vld [vmem:[%s608_s5 + $0x10] sm:$0xff]  ;;  %v235_v26 = vld [vmem:[%s608_s5 + $0x8] sm:$0xff] }
  0x24   :  { %367 = vmatprep.subr.mxu0 %v466_v0  ;;  %380 = vmatprep.subr.mxu1 %v466_v0  ;;  %v234_v27 = vld [vmem:[%s608_s5] sm:$0xff]  ;;  %v333_v28 = vld [vmem:[#allocation4] ss:$0 sm:$0xff] }
  0x25   :  { %368 = vmatpush3.msra.mxu0 %v54_v6  ;;  %381 = vmatpush3.msra.mxu1 %v148_v9  ;;  %v335_v33 = vld [vmem:[%s609_s6] ss:$0 sm:$0xff] }
  0x26   :  { %369 = vmatprep.subr.mxu0 %v466_v0  ;;  %382 = vmatprep.subr.mxu1 %v466_v0 }
  0x27   :  { %370 = vmatpush3.msra.mxu0 %v53_v8  ;;  %383 = vmatpush3.msra.mxu1 %v147_v11 }
  0x28   :  { %372 = vmatmul.mubr.msk.f32.vlgmr.msra.gmra.mxu0 %vm65_vm2, %v52_v10  ;;  %393 = vmatprep.subr.mxu0 %v466_v0 }
  0x29   :  { %384 = vmatprep.subr.mxu1 %v466_v0  ;;  %409 = vmatprep.mubr.msk.f32.mxu0 %vm467_vm0, %v466_v0 }
  0x2a   :  { %385 = vmatpush3.msra.mxu1 %v146_v12  ;;  %394 = vmatpush3.msra.mxu0 %v241_v15 }
  0x2b   :  { %386 = vmatprep.subr.mxu1 %v466_v0  ;;  %395 = vmatprep.subr.mxu0 %v466_v0 }
  0x2c   :  { %387 = vmatpush3.msra.mxu1 %v145_v13  ;;  %396 = vmatpush3.msra.mxu0 %v240_v16 }
  0x2d   :  { %388 = vmatprep.subr.mxu1 %v466_v0  ;;  %397 = vmatprep.subr.mxu0 %v466_v0 }
  0x2e   :  { %389 = vmatpush3.msra.mxu1 %v144_v14  ;;  %398 = vmatpush3.msra.mxu0 %v239_v17 }
  0x2f   :  { %399 = vmatprep.subr.mxu0 %v466_v0 }
  0x30   :  { %400 = vmatpush3.msra.mxu0 %v238_v18 }
  0x31   :  { %401 = vmatprep.subr.mxu0 %v466_v0 }
  0x32   :  { %402 = vmatpush3.msra.mxu0 %v237_v19 }
  0x33   :  { %403 = vmatprep.subr.mxu0 %v466_v0 }
  0x34   :  { %404 = vmatpush3.msra.mxu0 %v236_v25 }
  0x35   :  { %405 = vmatprep.subr.mxu0 %v466_v0 }
  0x36   :  { %406 = vmatpush3.msra.mxu0 %v235_v26 }
  0x37   :  { %407 = vmatprep.subr.mxu0 %v466_v0 }
  0x38   :  { %408 = vmatpush3.msra.mxu0 %v234_v27 }
  0xe8   :  { %v139_v21 = vpop.f32.mrf.mxu0 }
  0xe9   :  { %v140_v22 = vadd.f32 %v330_v20, %v139_v21 }
  0xea   :  { %v373_v23 = vpop.f32.mrf.mxu0 }
  0xeb   :  { %v143_v24 = vmax.f32 %v140_v22, 0.0 }
  0xed   :  { %391 = vmatmul.mubr.msk.f32.vlgmr.msra.gmra.mxu1 %vm159_vm3, %v143_v24 }
 0x1ad   :  { %v229_v29 = vpop.f32.mrf.mxu1 }
 0x1ae   :  { %v230_v30 = vadd.f32 %v333_v28, %v229_v29 }
 0x1af   :  { %v392_v31 = vpop.f32.mrf.mxu1 }
 0x1b0   :  { %v233_v32 = vmax.f32 %v230_v30, 0.0 }
 0x1b2   :  { %410 = vmatmul.mubr.msk.f32.vlgmr.msra.gmra.mxu0 %vm159_vm3, %v233_v32 }
 0x272   :  { %v318_v34 = vpop.f32.mrf.mxu0 }
 0x273   :  { %v319_v35 = vadd.f32 %v335_v33, %v318_v34 }
 0x274   :  { %v411_v36 = vpop.f32.mrf.mxu0 }
 0x275   :  { %323 = vst.msk [vmem:[%s610_s7] sm:$0xff] %vm322_vm4, %v319_v35 }
 0x276   :  { %328 = vsyncpa [#allocation3], 1 }
 0x277   :  { %329 = vsyncpa [#allocation5], 1 }

</bundles_post_ra>
